<compile_context>
chip_gen: v6e
topology: v6e:2x2x1
jax: 0.10.0
libtpu: 0.0.40
codegen_flags: <defaults>
</compile_context>

<pallas_src>
import math

import jax
import jax.numpy as jnp
from jax.experimental import pallas as pl
from jax.experimental.pallas import tpu as pltpu

LANE = 128      # lane width
MIN_TM = 16     # bf16 packs 16 sublanes per vreg


def _round_up(x, m):
    return (x + m - 1) // m * m


def mlp_kernel(x_ref, w1_ref, b1_ref, w2_ref, b2_ref, o_ref, acc_ref):
    """One (batch-tile i, K-tile k) step of  relu(x @ W1 + b1) @ W2 + b2."""
    k = pl.program_id(1)

    @pl.when(k == 0)
    def _init():
        acc_ref[...] = jnp.zeros_like(acc_ref)

    # Partial first-layer matmul over this K slab: bf16 x bf16 -> f32 acc (MXU).
    acc_ref[...] += jnp.dot(x_ref[...], w1_ref[...],
                            preferred_element_type=jnp.float32)

    @pl.when(k == pl.num_programs(1) - 1)
    def _finalize():
        h = jnp.maximum(acc_ref[...] + b1_ref[...], 0.0)        # bias + ReLU (VPU, f32)
        out = jnp.dot(h.astype(jnp.bfloat16), w2_ref[...],
                      preferred_element_type=jnp.float32) + b2_ref[...]
        o_ref[...] = out.astype(o_ref.dtype)                    # lane-dense (tm, Cp) store


def prepare_params(w1, b1, w2, b2, *, tk=2048):
    """Pad + cast the static parameters once, outside the per-call path.

    Padding is exact: padded w1 columns / b1 entries are 0 -> relu(0) = 0, and
    the matching padded w2 rows are 0, so padded hidden units and padded output
    logits contribute nothing to the real logits.
    """
    F, H = w1.shape
    Hw, C = w2.shape
    assert H == Hw and b1.shape == (1, H) and b2.shape == (1, C)

    tk = min(tk, _round_up(F, LANE))
    Fp = _round_up(F, tk)
    Hp = _round_up(H, LANE)
    Cp = _round_up(C, LANE)

    w1p = jnp.pad(w1, ((0, Fp - F), (0, Hp - H))).astype(jnp.bfloat16)
    b1p = jnp.pad(b1, ((0, 0), (0, Hp - H))).astype(jnp.float32)
    w2p = jnp.pad(w2, ((0, Hp - H), (0, Cp - C))).astype(jnp.bfloat16)
    b2p = jnp.pad(b2, ((0, 0), (0, Cp - C))).astype(jnp.float32)

    return dict(w1=w1p, b1=b1p, w2=w2p, b2=b2p,
                F=F, Fp=Fp, H=H, Hp=Hp, C=C, Cp=Cp, tk=tk)


def _pick_tm(B, tm_max, *, min_tm=MIN_TM, want_tiles=2):
    """Batch tile size; prefer >= `want_tiles` tiles so v7x's 2nd TC has work."""
    Bp = _round_up(max(B, min_tm), min_tm)
    tm = min(_round_up(tm_max, min_tm), Bp)
    if Bp // tm < want_tiles and Bp >= want_tiles * min_tm:
        tm = _round_up(-(-Bp // want_tiles), min_tm)
    Bp = _round_up(Bp, tm)
    return tm, Bp


def neural_net_forward(x, params, *, tm=512):
    """x: (B, F) float -> logits (B, C) float32, matching the PyTorch module."""
    B, F = x.shape
    F0, Fp, H, Hp, C, Cp, tk = (params[k] for k in
                                ("F", "Fp", "H", "Hp", "C", "Cp", "tk"))
    assert F == F0, f"expected {F0} features, got {F}"

    tm, Bp = _pick_tm(B, tm)

    # Per-call padding of activations only (cheap); zero rows/cols contribute 0.
    x = x.astype(jnp.bfloat16)
    if (Bp, Fp) != (B, F):
        x = jnp.pad(x, ((0, Bp - B), (0, Fp - F)))

    grid = (Bp // tm, Fp // tk)        # (batch tiles: parallel, K tiles: arbitrary)
    n_bt = grid[0]

    # Advisory cost for XLA (w1 is re-streamed once per batch tile).
    flops = 2 * Bp * (Fp * Hp + Hp * Cp)
    bytes_accessed = (Bp * Fp * 2                                  # x, bf16
                      + n_bt * Fp * Hp * 2                         # w1 per batch tile
                      + n_bt * (Hp * 4 + Hp * Cp * 2 + Cp * 4)     # b1 / w2 / b2
                      + Bp * Cp * 4)                               # output, f32

    # Explicit VMEM budget: double-buffered x/w1 slabs + f32 accumulator +
    # resident second-layer params + output tiles.  Cap below v7x's 64 MiB.
    vmem_need = (2 * tm * tk * 2 + 2 * tk * Hp * 2 + tm * Hp * 4
                 + 2 * (Hp * Cp * 2 + Hp * 4 + Cp * 4) + 2 * tm * Cp * 4)
    vmem_limit = int(min(max(2 * vmem_need, 32 * 1024 * 1024), 60 * 1024 * 1024))

    out = pl.pallas_call(
        mlp_kernel,
        out_shape=jax.ShapeDtypeStruct((Bp, Cp), jnp.float32),
        grid=grid,
        in_specs=[
            pl.BlockSpec((tm, tk), lambda i, k: (i, k)),   # x tile (streams over K)
            pl.BlockSpec((tk, Hp), lambda i, k: (k, 0)),   # w1 K-slab (streams over K)
            pl.BlockSpec((1, Hp),  lambda i, k: (0, 0)),   # b1: VMEM-resident
            pl.BlockSpec((Hp, Cp), lambda i, k: (0, 0)),   # w2: VMEM-resident
            pl.BlockSpec((1, Cp),  lambda i, k: (0, 0)),   # b2: VMEM-resident
        ],
        out_specs=pl.BlockSpec((tm, Cp), lambda i, k: (i, 0)),  # resident across K
        scratch_shapes=[pltpu.VMEM((tm, Hp), jnp.float32)],     # hidden accumulator
        compiler_params=pltpu.CompilerParams(
            dimension_semantics=("parallel", "arbitrary"),
            vmem_limit_bytes=vmem_limit),
        cost_estimate=pl.CostEstimate(
            flops=flops, transcendentals=0, bytes_accessed=bytes_accessed),
    )(x, params["w1"], params["b1"], params["w2"], params["b2"])

    return out[:B, :C]


def init_linear(key, fan_in, fan_out):
    # Mirror torch.nn.Linear default init: U(-1/sqrt(fan_in), 1/sqrt(fan_in)).
    kw, kb = jax.random.split(key)
    bound = 1.0 / math.sqrt(fan_in)
    w = jax.random.uniform(kw, (fan_in, fan_out), jnp.float32, -bound, bound)
    b = jax.random.uniform(kb, (1, fan_out), jnp.float32, -bound, bound)
    return w, b


if __name__ == "__main__":
    # Small synthetic shapes consistent with the module: TF-IDF vocab (here 1000,
    # deliberately not a K-slab multiple) -> hidden=300 -> 5 classes (BBC).
    num_features = 1000
    num_hidden = 300
    num_classes = 5

    key = jax.random.PRNGKey(0)
    kx, k1, k2 = jax.random.split(key, 3)

    w1, b1 = init_linear(k1, num_features, num_hidden)
    w2, b2 = init_linear(k2, num_hidden, num_classes)
    # Small tk in the test so the multi-K-step accumulation path is exercised.
    params = prepare_params(w1, b1, w2, b2, tk=512)

    ok = True
    for batch in (8, 40):    # batch=40 -> two batch tiles (exercises the parallel axis)
        kx, sub = jax.random.split(kx)
        # TF-IDF features are non-negative; |N(0,1)| mimics sparse-ish positives.
        x = jnp.abs(jax.random.normal(sub, (batch, num_features), jnp.float32))

        out = neural_net_forward(x, params)
        jax.block_until_ready(out)

        # Reference check against plain f32 JAX (bf16 inputs + f32 accumulation
        # -> ~0.5% relative error budget).
        ref = jnp.maximum(x @ w1 + b1, 0.0) @ w2 + b2
        ok &= out.shape == (batch, num_classes)
        ok &= bool(jnp.allclose(out, ref, atol=5e-2, rtol=5e-2))

    assert ok
    print("KERNEL_OK")
</pallas_src>

<mosaic_0001>
module attributes {stable_mosaic.version = 11 : i64} {
  func.func @mlp_kernel(%arg0: i32, %arg1: i32, %arg2: memref<16x512xbf16, #tpu.memory_space<vmem>>, %arg3: memref<512x384xbf16, #tpu.memory_space<vmem>>, %arg4: memref<1x384xf32, #tpu.memory_space<vmem>>, %arg5: memref<384x128xbf16, #tpu.memory_space<vmem>>, %arg6: memref<1x128xf32, #tpu.memory_space<vmem>>, %arg7: memref<16x128xf32, #tpu.memory_space<vmem>>, %arg8: memref<16x384xf32, #tpu.memory_space<vmem>>) attributes {dimension_semantics = [#tpu.dimension_semantics<parallel>, #tpu.dimension_semantics<arbitrary>], iteration_bounds = array<i64: 1, 2>, scalar_prefetch = 0 : i64, scratch_operands = 1 : i64, tpu.core_type = #tpu.core_type<tc>, window_params = [{transform_indices = @transform_0, window_bounds = array<i64: 16, 512>}, {transform_indices = @transform_1, window_bounds = array<i64: 512, 384>}, {pipeline_mode = #tpu.pipeline_mode<synchronous>, transform_indices = @transform_2, window_bounds = array<i64: 1, 384>}, {pipeline_mode = #tpu.pipeline_mode<synchronous>, transform_indices = @transform_3, window_bounds = array<i64: 384, 128>}, {pipeline_mode = #tpu.pipeline_mode<synchronous>, transform_indices = @transform_4, window_bounds = array<i64: 1, 128>}, {transform_indices = @transform_5, window_bounds = array<i64: 16, 128>}]} {
    %c0_i32 = arith.constant 0 : i32
    %0 = arith.cmpi eq, %arg1, %c0_i32 : i32
    %1 = arith.extui %0 : i1 to i32
    %c0_i32_0 = arith.constant 0 : i32
    %2 = arith.cmpi ne, %1, %c0_i32_0 : i32
    scf.if %2 {
      %cst_9 = arith.constant 0.000000e+00 : f32
      %12 = vector.broadcast %cst_9 : f32 to vector<16x384xf32>
      %c0_10 = arith.constant 0 : index
      %c0_11 = arith.constant 0 : index
      %13 = vector.load %arg8[%c0_10, %c0_11] : memref<16x384xf32, #tpu.memory_space<vmem>>, vector<16x384xf32>
      tpu.vector_store %arg8[%c0_10, %c0_11], %12 {strides = array<i32>} : memref<16x384xf32, #tpu.memory_space<vmem>>, vector<16x384xf32>,
    } else {
    }
    %c0 = arith.constant 0 : index
    %c0_1 = arith.constant 0 : index
    %3 = vector.load %arg8[%c0, %c0_1] : memref<16x384xf32, #tpu.memory_space<vmem>>, vector<16x384xf32>
    %c0_2 = arith.constant 0 : index
    %c0_3 = arith.constant 0 : index
    %4 = vector.load %arg2[%c0_2, %c0_3] : memref<16x512xbf16, #tpu.memory_space<vmem>>, vector<16x512xbf16>
    %c0_4 = arith.constant 0 : index
    %c0_5 = arith.constant 0 : index
    %5 = vector.load %arg3[%c0_4, %c0_5] : memref<512x384xbf16, #tpu.memory_space<vmem>>, vector<512x384xbf16>
    %cst = arith.constant dense<0.000000e+00> : vector<16x384xf32>
    %6 = tpu.matmul %4, %5, %cst {dimension_numbers = #tpu.dot_dimension_numbers<[1], [0], [0], [1], [0, 0, 1, 1], [], []>} : vector<16x512xbf16>, vector<512x384xbf16>, vector<16x384xf32> -> vector<16x384xf32>
    %7 = arith.addf %3, %6 : vector<16x384xf32>
    %c0_6 = arith.constant 0 : index
    %c0_7 = arith.constant 0 : index
    %8 = vector.load %arg8[%c0_6, %c0_7] : memref<16x384xf32, #tpu.memory_space<vmem>>, vector<16x384xf32>
    tpu.vector_store %arg8[%c0_6, %c0_7], %7 {strides = array<i32>} : memref<16x384xf32, #tpu.memory_space<vmem>>, vector<16x384xf32>,
    %c1_i32 = arith.constant 1 : i32
    %9 = arith.cmpi eq, %arg1, %c1_i32 : i32
    %10 = arith.extui %9 : i1 to i32
    %c0_i32_8 = arith.constant 0 : i32
    %11 = arith.cmpi ne, %10, %c0_i32_8 : i32
    scf.if %11 {
      %c0_9 = arith.constant 0 : index
      %c0_10 = arith.constant 0 : index
      %12 = vector.load %arg8[%c0_9, %c0_10] : memref<16x384xf32, #tpu.memory_space<vmem>>, vector<16x384xf32>
      %c0_11 = arith.constant 0 : index
      %c0_12 = arith.constant 0 : index
      %13 = vector.load %arg4[%c0_11, %c0_12] : memref<1x384xf32, #tpu.memory_space<vmem>>, vector<1x384xf32>
      %14 = vector.broadcast %13 : vector<1x384xf32> to vector<16x384xf32>
      %15 = arith.addf %12, %14 : vector<16x384xf32>
      %cst_13 = arith.constant 0.000000e+00 : f32
      %16 = vector.broadcast %cst_13 : f32 to vector<16x384xf32>
      %17 = arith.maximumf %15, %16 : vector<16x384xf32>
      %18 = arith.truncf %17 : vector<16x384xf32> to vector<16x384xbf16>
      %c0_14 = arith.constant 0 : index
      %c0_15 = arith.constant 0 : index
      %19 = vector.load %arg5[%c0_14, %c0_15] : memref<384x128xbf16, #tpu.memory_space<vmem>>, vector<384x128xbf16>
      %cst_16 = arith.constant dense<0.000000e+00> : vector<16x128xf32>
      %20 = tpu.matmul %18, %19, %cst_16 {dimension_numbers = #tpu.dot_dimension_numbers<[1], [0], [0], [1], [0, 0, 1, 1], [], []>} : vector<16x384xbf16>, vector<384x128xbf16>, vector<16x128xf32> -> vector<16x128xf32>
      %c0_17 = arith.constant 0 : index
      %c0_18 = arith.constant 0 : index
      %21 = vector.load %arg6[%c0_17, %c0_18] : memref<1x128xf32, #tpu.memory_space<vmem>>, vector<1x128xf32>
      %22 = vector.broadcast %21 : vector<1x128xf32> to vector<16x128xf32>
      %23 = arith.addf %20, %22 : vector<16x128xf32>
      %c0_19 = arith.constant 0 : index
      %c0_20 = arith.constant 0 : index
      %24 = vector.load %arg7[%c0_19, %c0_20] : memref<16x128xf32, #tpu.memory_space<vmem>>, vector<16x128xf32>
      tpu.vector_store %arg7[%c0_19, %c0_20], %23 {strides = array<i32>} : memref<16x128xf32, #tpu.memory_space<vmem>>, vector<16x128xf32>,
    } else {
    }
    return
  }
  func.func @transform_0(%arg0: i32, %arg1: i32) -> (i32, i32) {
    %c0_i32 = arith.constant 0 : i32
    return %arg0, %arg1 : i32, i32
  }
  func.func @transform_1(%arg0: i32, %arg1: i32) -> (i32, i32) {
    %c0_i32 = arith.constant 0 : i32
    %c0_i32_0 = arith.constant 0 : i32
    return %arg1, %c0_i32 : i32, i32
  }
  func.func @transform_2(%arg0: i32, %arg1: i32) -> (i32, i32) {
    %c0_i32 = arith.constant 0 : i32
    %c0_i32_0 = arith.constant 0 : i32
    %c0_i32_1 = arith.constant 0 : i32
    return %c0_i32, %c0_i32_0 : i32, i32
  }
  func.func @transform_3(%arg0: i32, %arg1: i32) -> (i32, i32) {
    %c0_i32 = arith.constant 0 : i32
    %c0_i32_0 = arith.constant 0 : i32
    %c0_i32_1 = arith.constant 0 : i32
    return %c0_i32, %c0_i32_0 : i32, i32
  }
  func.func @transform_4(%arg0: i32, %arg1: i32) -> (i32, i32) {
    %c0_i32 = arith.constant 0 : i32
    %c0_i32_0 = arith.constant 0 : i32
    %c0_i32_1 = arith.constant 0 : i32
    return %c0_i32, %c0_i32_0 : i32, i32
  }
  func.func @transform_5(%arg0: i32, %arg1: i32) -> (i32, i32) {
    %c0_i32 = arith.constant 0 : i32
    %c0_i32_0 = arith.constant 0 : i32
    return %arg0, %c0_i32 : i32, i32
  }
}

</mosaic_0001>

<bundles_post_ra>
// kernel: tpu_custom_call.1
= control target key start
LH: loop header
LB: loop body
LE: loop exit
PB: predicated region body
PF: predicated region fallthrough
CT: control target
= control target key end

     0   :  { %s2594_s0 = inlined_call_operand.hbm [shape: bf16[16,1024], index: 0, kind: input, shape index: {}]   ;;  %s2595_s1 = inlined_call_operand.hbm [shape: bf16[1024,384], index: 1, kind: input, shape index: {}]   ;;  %s2596_s2 = inlined_call_operand.vmem [shape: f32[1,384], index: 2, kind: input, shape index: {}]   ;;  %s2597_s3 = inlined_call_operand.hbm [shape: bf16[384,128], index: 3, kind: input, shape index: {}]   ;;  %s2598_s4 = inlined_call_operand.vmem [shape: f32[1,128], index: 4, kind: input, shape index: {}]   ;;  %s2599_s5 = inlined_call_operand.hbm [shape: f32[16,128], index: 5, kind: output, shape index: {}]  }
   0x1   :  { %2604 = sst [smem:[#allocation17_spill]] %s2594_s0 }
   0x2   :  { %2605 = sst [smem:[#allocation18_spill]] %s2597_s3 }
   0x3   :  { %10 = vsyncpa [#allocation4], 0 }
   0x4   :  { %12 = vsyncpa [#allocation4 + $0x1], 0 }
   0x5   :  { %13 = vsyncpa [#allocation7], 0 }
   0x6   :  { %15 = vsyncpa [#allocation7 + $0x1], 0 }
   0x7   :  { %16 = vsyncpa [#allocation5], 0  ;;  %s2313_s18 = smov 0   ;;  %s2315_s19 = smov 0  }
   0x8   :  { %s2317_s20 = smov 0   ;;  %s2319_s21 = smov 0  }
   0x9   :  { %s2321_s22 = smov 0   ;;  %s2323_s23 = smov 0  }
   0xa LB: > { %2606 = sst [smem:[#allocation14_spill]] %s2253_s20  ;;  %s2342_s24 = sadd.s32 4294967295, %s2265_s23   ;;  %s2265_s23 = sphi %s2323_s23, %s22_s23   ;;  %s2261_s22 = sphi %s2321_s22, %s2623_s22   ;;  %s2257_s21 = sphi %s2319_s21, %s2622_s21   ;;  %s2253_s20 = sphi %s2317_s20, %s2618_s20   ;;  %s2249_s19 = sphi %s2315_s19, %s2621_s19   ;;  %s2245_s18 = sphi %s2313_s18, %s2620_s18  }
   0xb   : > { %s43_s25 = sadd.s32 1, %s2253_s20  ;;  %p50_p0 = scmp.ne.s32.totalorder %s2253_s20, %s2249_s19 }
   0xc   : > { %p51_p1 = scmp.eq.s32.totalorder %s2265_s23, 0  ;;  %p56_p2 = scmp.ne.s32.totalorder %s2249_s19, %s2245_s18 }
   0xd   : > { %p57_p3 = scmp.eq.s32.totalorder %s2342_s24, 0  ;;  %p1607_p5 = scmp.ge.s32.totalorder %s2265_s23, 1 }
   0xe   : > { %p52_p4 = por %p51_p1, %p50_p0  ;;  %p182_p7 = scmp.lt.s32.totalorder %s2265_s23, 3 }
   0xf   : > { %p2353_p6 = por %p57_p3, %p56_p2  ;;  %s2267_s28 = smov [#allocation8]  }
  0x10   : > { %p2358_p8 = pnand %p1607_p5, %p182_p7  ;;  %s197_s29 = sshll.u32 %s2267_s28, 4  ;;  %s198_s29 = int_to_ptr.vmem [resolvable:$true] %s197_s29 }
  0x11   : > { %s2607_s26 = scalar_select %p2353_p6, 1, 0 }
  0x12   : > { %s2608_s27 = scalar_select %p2358_p8, 1, 0 }
  0x13   : > { %p1861_p9 = pneg %p2358_p8  ;;  %p1873_p10 = scmp.lt.s32.totalorder %s2265_s23, 2 }
  0x14   : > { %s31_s7 = sadd.s32 1, %s2261_s22  ;;  %s2108_s8 = scalar_lea.vmem %s198_s29, 3072 }
  0x15   : > { %p2367_p11 = pnand %p1861_p9, %p57_p3  ;;  %p2371_p12 = pnand %p1873_p10, %p52_p4 }
  0x16   : > { %p2109_p0 = scmp.ne.s32.totalorder %s198_s29, %s2108_s8  ;;  %p2116_p5 = scmp.lt.s32.totalorder %s198_s29, %s198_s29 }
  0x17   : > { %p2099_p13 = pneg %p2367_p11  ;;  %p2117_p7 = scmp.lt.s32.totalorder %s2108_s8, %s2108_s8 }
  0x19   : > { %p2111_p1 = pnand %p2109_p0, %p2099_p13  ;;  %p2118_p6 = por %p2117_p7, %p2116_p5 }
  0x1b   : > { %p2112_p2 = pneg %p2111_p1 }
  0x1d   : > { %p2119_p8 = pnand %p2118_p6, %p2112_p2 }
  0x1f   : > { %2122 = shalt.err (!%p2119_p8)
}
  0x20   : > { %s2268_s9 = smov 64   ;;  %s2269_s10 = smov 4  }
  0x21   : > { %s2611_s3 = sld [smem:[#allocation18_spill]]  ;;  %p32_p4 = scmp.ge.s32.totalorder %s31_s7, 2 }
  0x22   : > { %s2384_s13 = sand.u32 1, %s2253_s20   ;;  %s1750_s14 = sshll.u32 %s2261_s22, 8 }
  0x23   : > { %s2625_s7 = smov (%p32_p4, %s31_s7), 0  ;;  %s1610_s15 = sshll.u32 %s2384_s13, 5 }
  0x24   : > { %2612 = sst [smem:[#allocation15_spill]] %s2625_s7  ;;  %s39_s16 = ssub.s32 %s2261_s22, %s2625_s7 }
  0x25   : > { %p41_p6 = scmp.eq.s32.totalorder %s39_s16, 0  ;;  %s2613_s0 = sld [smem:[#allocation17_spill]] }
  0x26   : > { %s218_s30 = scalar_lea.vmem [#allocation3], %s1610_s15  ;;  %p2125_p8 = pneg %p2371_p12 }
  0x27   : > { %1864 = dma.hbm_to_vmem [thread:$0]  (!%p2367_p11), %s2611_s3, 3072, %s198_s29, [#allocation7], %s2268_s9, %s2268_s9, %s2269_s10  }
  0x28   : > { %s228_s8 = sshll.u32 %s218_s30, 4  ;;  %s238_s9 = sand.u32 1, %s2265_s23   ;;  %s229_s8 = int_to_ptr.vmem [resolvable:$true] %s228_s8 }
  0x29   : > { %s2398_s29 = scalar_select %p41_p6, %s2253_s20, %s43_s25  }
  0x2a   : > { %s215_s10 = scalar_lea.sflag [#allocation4], %s2384_s13  ;;  %s2136_s11 = scalar_lea.vmem %s229_s8, 512 }
  0x2b   : > { %s227_s28 = scalar_lea.hbm %s2613_s0, %s1750_s14  ;;  %2614 = sst [smem:[#allocation16_spill]] %s2398_s29 }
  0x2c   : > { %p2137_p9 = scmp.ne.s32.totalorder %s229_s8, %s2136_s11  ;;  %s2270_s12 = smov [#allocation3]  }
  0x2d   : > { %s2141_s16 = sshll.u32 %s2270_s12, 4  ;;  %s2142_s16 = int_to_ptr.vmem [resolvable:$false] %s2141_s16 }
  0x2e   : > { %p2139_p10 = pnand %p2137_p9, %p2125_p8  ;;  %s2143_s14 = scalar_lea.vmem %s2142_s16, 1024 }
  0x2f   : > { %p2144_p13 = scmp.lt.s32.totalorder %s229_s8, %s2142_s16  ;;  %p2145_p0 = scmp.lt.s32.totalorder %s2143_s14, %s2136_s11 }
  0x30   : > { %p2140_p11 = pneg %p2139_p10 }
  0x31   : > { %p2146_p1 = por %p2145_p0, %p2144_p13 }
  0x33   : > { %p2147_p2 = pnand %p2146_p1, %p2140_p11 }
  0x35   : > { %2150 = shalt.err (!%p2147_p2)
}
  0x36   : > { %s2271_s25 = smov 512   ;;  %s2272_s15 = smov 256  }
  0x37   : > { %s2273_s17 = smov 16   ;;  %s1846_s18 = smul.u32 768, %s2384_s13 }
  0x38   : > { %1868 = dma.hbm_to_vmem [thread:$0]  (!%p2371_p12), %s227_s28, 512, %s229_s8, %s215_s10, %s2271_s25, %s2272_s15, %s2273_s17  }
  0x39   : > { %s1847_s30 = smul.u32 12288, %s2261_s22  ;;  %s242_s16 = scalar_lea.vmem [#allocation6], %s1846_s18 }
  0x3a   : > { %s250_s11 = sshll.u32 %s242_s16, 4  ;;  %s239_s14 = scalar_lea.sflag [#allocation7], %s238_s9  ;;  %s251_s11 = int_to_ptr.vmem [resolvable:$true] %s250_s11 }
  0x3b   : > { %s249_s3 = scalar_lea.hbm %s2595_s1, %s1847_s30  ;;  %s2164_s7 = scalar_lea.vmem %s251_s11, 12288 }
  0x3c   : > { %p2165_p5 = scmp.ne.s32.totalorder %s251_s11, %s2164_s7  ;;  %s2274_s29 = smov [#allocation6]  }
  0x3d   : > { %s2169_s20 = sshll.u32 %s2274_s29, 4  ;;  %s2170_s20 = int_to_ptr.vmem [resolvable:$false] %s2169_s20 }
  0x3e   : > { %p2167_p7 = pnand %p2165_p5, %p2125_p8  ;;  %s2171_s28 = scalar_lea.vmem %s2170_s20, 24576 }
  0x3f   : > { %p2172_p6 = scmp.lt.s32.totalorder %s251_s11, %s2170_s20  ;;  %p2173_p9 = scmp.lt.s32.totalorder %s2171_s28, %s2164_s7 }
  0x40   : > { %p2168_p4 = pneg %p2167_p7 }
  0x41   : > { %p2174_p10 = por %p2173_p9, %p2172_p6 }
  0x43   : > { %p2175_p11 = pnand %p2174_p10, %p2168_p4 }
  0x45   : > { %2178 = shalt.err (!%p2175_p11)
}
  0x46   : > { %s2275_s0 = smov 192   ;;  %s2276_s13 = smov 12  }
  0x47   : > { %1871 = dma.hbm_to_vmem [thread:$0]  (!%p2371_p12), %s249_s3, 12288, %s251_s11, %s239_s14, %s2275_s0, %s2275_s0, %s2276_s13  }
  0x48   : > { %p2615_p13 = scmp.ne.s32.totalorder %s2608_s27, 0 }
  0x49   : > { %s264_s8 = sand.u32 (!%p2615_p13), 1, %s2249_s19   ;;  %p2616_p8 = scmp.ne.s32.totalorder (!%p2615_p13), %s2607_s26, 0 }
  0x4a   : > { %262 = sbr.rel (%p2615_p13) target bundleno = 656 (0x290), region = 40  ;;  %s1617_s9 = sshll.u32 (!%p2615_p13), %s264_s8, 5 }
  0x4b   : > { %s265_s29 = scalar_lea.sflag (!%p2615_p13), [#allocation4], %s264_s8  ;;  %s2422_s10 = scalar_lea.vmem (!%p2615_p13), [#allocation3], %s1617_s9 }
  0x4f   : > { %2228 = dma.done.wait (%p2616_p8), %s265_s29, 512  }
  0x50   : > { %2230 = vsyncadd (%p2616_p8), %s265_s29, 4294966784  ;;  %s273_s20 = sand.u32 1, %s2342_s24   ;;  %s1848_s6 = smul.u32 768, %s264_s8 }
  0x51   : > { %s274_s3 = scalar_lea.sflag [#allocation7], %s273_s20 }
  0x52   : > { %s2429_s7 = scalar_lea.vmem [#allocation6], %s1848_s6 }
  0x53   : > { %2232 = dma.done.wait (%p2616_p8), %s274_s3, 12288  }
  0x54   : > { %2234 = vsyncadd (%p2616_p8), %s274_s3, 4294955008 }
  0x55   : > { %2236 = dma.done.wait (%p57_p3), [#allocation7], 3072  }
  0x56   : > { %2238 = vsyncadd (%p57_p3), [#allocation7], 4294964224  ;;  %p1619_p12 = scmp.ne.s32.totalorder %s2257_s21, 0 }
  0x58   : > { %316 = sbr.rel (%p1619_p12) target bundleno = 97 (0x61), region = 56 }
  0x5d   : > { %v2277_v0 = vmov 0.0  }
  0x5e   : > { %317 = vst [vmem:[#allocation2 + $0x28] sm:$0xff] %v2277_v0  ;;  %318 = vst [vmem:[#allocation2 + $0x10] sm:$0xff] %v2277_v0 }
  0x5f   : > { %319 = vst [vmem:[#allocation2 + $0x8] sm:$0xff] %v2277_v0  ;;  %320 = vst [vmem:[#allocation2] sm:$0xff] %v2277_v0 }
  0x60   : > { %321 = vst [vmem:[#allocation2 + $0x18] sm:$0xff] %v2277_v0  ;;  %322 = vst [vmem:[#allocation2 + $0x20] sm:$0xff] %v2277_v0 }
  0x61 PF: > { %v1939_v1 = vld [vmem:[%s2429_s7 + $0xac] ss:$12 sps:$4 sm:$0xff]   ;;  %v1943_v3 = vld [vmem:[%s2429_s7 + $0xa8] ss:$12 sps:$4 sm:$0xff]   ;;  %v1949_v7 = vld [vmem:[%s2429_s7 + $0x90] ss:$12 sps:$4 sm:$0xff]  }
  0x62   : > { %v1941_v2 = vld [vmem:[%s2429_s7 + $0x22c] ss:$12 sps:$4 sm:$0xff]   ;;  %993 = vmatprep.subr.bf16.mxu0 %v1939_v1  ;;  %v1944_v4 = vld [vmem:[%s2429_s7 + $0x228] ss:$12 sps:$4 sm:$0xff]   ;;  %v1950_v8 = vld [vmem:[%s2429_s7 + $0x210] ss:$12 sps:$4 sm:$0xff]  }
  0x63   : > { %1036 = vmatprep.subr.bf16.mxu1 %v1941_v2  ;;  %v1945_v5 = vld [vmem:[%s2429_s7 + $0x94] ss:$12 sps:$4 sm:$0xff]   ;;  %994 = vmatpush1.bf16.msra.mxu0 %v1943_v3  ;;  %v1951_v9 = vld [vmem:[%s2429_s7 + $0x7c] ss:$12 sps:$4 sm:$0xff]   ;;  %v1955_v11 = vld [vmem:[%s2429_s7 + $0x78] ss:$12 sps:$4 sm:$0xff]  }
  0x64   : > { %1037 = vmatpush1.bf16.msra.mxu1 %v1944_v4  ;;  %v1947_v6 = vld [vmem:[%s2429_s7 + $0x214] ss:$12 sps:$4 sm:$0xff]   ;;  %995 = vmatprep.subr.bf16.mxu0 %v1945_v5  ;;  %v1953_v10 = vld [vmem:[%s2429_s7 + $0x1fc] ss:$12 sps:$4 sm:$0xff]   ;;  %v1956_v12 = vld [vmem:[%s2429_s7 + $0x1f8] ss:$12 sps:$4 sm:$0xff]  }
  0x65   : > { %1038 = vmatprep.subr.bf16.mxu1 %v1947_v6  ;;  %v1957_v13 = vld [vmem:[%s2429_s7 + $0x64] ss:$12 sps:$4 sm:$0xff]   ;;  %v1961_v15 = vld [vmem:[%s2429_s7 + $0x60] ss:$12 sps:$4 sm:$0xff]   ;;  %v1967_v19 = vld [vmem:[%s2429_s7 + $0x48] ss:$12 sps:$4 sm:$0xff]  }
  0x66   : > { %v1959_v14 = vld [vmem:[%s2429_s7 + $0x1e4] ss:$12 sps:$4 sm:$0xff]   ;;  %v1962_v16 = vld [vmem:[%s2429_s7 + $0x1e0] ss:$12 sps:$4 sm:$0xff]   ;;  %v1968_v20 = vld [vmem:[%s2429_s7 + $0x1c8] ss:$12 sps:$4 sm:$0xff]  }
  0x67   : > { %996 = vmatpush1.bf16.msra.mxu0 %v1949_v7  ;;  %v1963_v17 = vld [vmem:[%s2429_s7 + $0x4c] ss:$12 sps:$4 sm:$0xff]   ;;  %v1969_v21 = vld [vmem:[%s2429_s7 + $0x34] ss:$12 sps:$4 sm:$0xff]   ;;  %v1973_v23 = vld [vmem:[%s2429_s7 + $0x30] ss:$12 sps:$4 sm:$0xff]  }
  0x68   : > { %1039 = vmatpush1.bf16.msra.mxu1 %v1950_v8  ;;  %997 = vmatprep.subr.bf16.mxu0 %v1951_v9  ;;  %v1965_v18 = vld [vmem:[%s2429_s7 + $0x1cc] ss:$12 sps:$4 sm:$0xff]   ;;  %v1971_v22 = vld [vmem:[%s2429_s7 + $0x1b4] ss:$12 sps:$4 sm:$0xff]   ;;  %v1974_v24 = vld [vmem:[%s2429_s7 + $0x1b0] ss:$12 sps:$4 sm:$0xff]  }
  0x69   : > { %1040 = vmatprep.subr.bf16.mxu1 %v1953_v10  ;;  %v1975_v25 = vld [vmem:[%s2429_s7 + $0x1c] ss:$12 sps:$4 sm:$0xff]   ;;  %v1979_v27 = vld [vmem:[%s2429_s7 + $0x18] ss:$12 sps:$4 sm:$0xff]   ;;  %v1985_v31 = vld [vmem:[%s2429_s7] ss:$12 sps:$4 sm:$0xff]  }
  0x6a   : > { %v1977_v26 = vld [vmem:[%s2429_s7 + $0x19c] ss:$12 sps:$4 sm:$0xff]   ;;  %v1980_v28 = vld [vmem:[%s2429_s7 + $0x198] ss:$12 sps:$4 sm:$0xff]   ;;  %v1986_v32 = vld [vmem:[%s2429_s7 + $0x180] ss:$12 sps:$4 sm:$0xff]  }
  0x6b   : > { %998 = vmatpush1.bf16.msra.mxu0 %v1955_v11  ;;  %v1981_v29 = vld [vmem:[%s2429_s7 + $0x4] ss:$12 sps:$4 sm:$0xff]   ;;  %v1987_v33 = vld [vmem:[%s2429_s7 + $0x16c] ss:$12 sps:$4 sm:$0xff]   ;;  %v1991_v35 = vld [vmem:[%s2429_s7 + $0x168] ss:$12 sps:$4 sm:$0xff]  }
  0x6c   : > { %1041 = vmatpush1.bf16.msra.mxu1 %v1956_v12  ;;  %999 = vmatprep.subr.bf16.mxu0 %v1957_v13  ;;  %v1983_v30 = vld [vmem:[%s2429_s7 + $0x184] ss:$12 sps:$4 sm:$0xff]   ;;  %v1989_v34 = vld [vmem:[%s2429_s7 + $0x2ec] ss:$12 sps:$4 sm:$0xff]   ;;  %v1992_v36 = vld [vmem:[%s2429_s7 + $0x2e8] ss:$12 sps:$4 sm:$0xff]  }
  0x6d   : > { %1042 = vmatprep.subr.bf16.mxu1 %v1959_v14  ;;  %v1993_v37 = vld [vmem:[%s2429_s7 + $0x154] ss:$12 sps:$4 sm:$0xff]   ;;  %v1997_v39 = vld [vmem:[%s2429_s7 + $0x150] ss:$12 sps:$4 sm:$0xff]   ;;  %v2003_v43 = vld [vmem:[%s2429_s7 + $0x138] ss:$12 sps:$4 sm:$0xff]  }
  0x6e   : > { %v1995_v38 = vld [vmem:[%s2429_s7 + $0x2d4] ss:$12 sps:$4 sm:$0xff]   ;;  %v1998_v40 = vld [vmem:[%s2429_s7 + $0x2d0] ss:$12 sps:$4 sm:$0xff]   ;;  %v2004_v44 = vld [vmem:[%s2429_s7 + $0x2b8] ss:$12 sps:$4 sm:$0xff]  }
  0x6f   : > { %1000 = vmatpush1.bf16.msra.mxu0 %v1961_v15  ;;  %v1999_v41 = vld [vmem:[%s2429_s7 + $0x13c] ss:$12 sps:$4 sm:$0xff]   ;;  %v2005_v45 = vld [vmem:[%s2429_s7 + $0x124] ss:$12 sps:$4 sm:$0xff]   ;;  %v2009_v47 = vld [vmem:[%s2429_s7 + $0x120] ss:$12 sps:$4 sm:$0xff]  }
  0x70   : > { %1043 = vmatpush1.bf16.msra.mxu1 %v1962_v16  ;;  %1001 = vmatprep.subr.bf16.mxu0 %v1963_v17  ;;  %v2001_v42 = vld [vmem:[%s2429_s7 + $0x2bc] ss:$12 sps:$4 sm:$0xff]   ;;  %v2007_v46 = vld [vmem:[%s2429_s7 + $0x2a4] ss:$12 sps:$4 sm:$0xff]   ;;  %v2010_v48 = vld [vmem:[%s2429_s7 + $0x2a0] ss:$12 sps:$4 sm:$0xff]  }
  0x71   : > { %1044 = vmatprep.subr.bf16.mxu1 %v1965_v18  ;;  %v2011_v49 = vld [vmem:[%s2429_s7 + $0x10c] ss:$12 sps:$4 sm:$0xff]   ;;  %v2037_v50 = vld [vmem:[%s2422_s10 + $0x4] ss:$16 sps:$4 sm:$0xff]   ;;  %v2021_v57 = vld [vmem:[%s2429_s7 + $0xf0] ss:$12 sps:$4 sm:$0xff]  }
  0x72   : > { %v2013_v51 = vld [vmem:[%s2429_s7 + $0x28c] ss:$12 sps:$4 sm:$0xff]   ;;  %v2015_v53 = vld [vmem:[%s2429_s7 + $0x108] ss:$12 sps:$4 sm:$0xff]   ;;  %1025 = vmatprep.mubr.bf16.mxu0 %v2037_v50  ;;  %v2022_v58 = vld [vmem:[%s2429_s7 + $0x270] ss:$12 sps:$4 sm:$0xff]  }
  0x73   : > { %1002 = vmatpush1.bf16.msra.mxu0 %v1967_v19  ;;  %v2040_v52 = vld [vmem:[%s2422_s10 + $0xc] ss:$16 sps:$4 sm:$0xff]   ;;  %v2016_v54 = vld [vmem:[%s2429_s7 + $0x288] ss:$12 sps:$4 sm:$0xff]   ;;  %v2027_v61 = vld [vmem:[%s2429_s7 + $0xd8] ss:$12 sps:$4 sm:$0xff]  }
  0x74   : > { %1045 = vmatpush1.bf16.msra.mxu1 %v1968_v20  ;;  %1003 = vmatprep.subr.bf16.mxu0 %v1969_v21  ;;  %v2017_v55 = vld [vmem:[%s2429_s7 + $0xf4] ss:$12 sps:$4 sm:$0xff]   ;;  %v2023_v59 = vld [vmem:[%s2429_s7 + $0xdc] ss:$12 sps:$4 sm:$0xff]   ;;  %v2028_v62 = vld [vmem:[%s2429_s7 + $0x258] ss:$12 sps:$4 sm:$0xff]  }
  0x75   : > { %1046 = vmatprep.subr.bf16.mxu1 %v1971_v22  ;;  %1068 = vmatprep.mubr.bf16.mxu1 %v2040_v52  ;;  %v2019_v56 = vld [vmem:[%s2429_s7 + $0x274] ss:$12 sps:$4 sm:$0xff]   ;;  %v2025_v60 = vld [vmem:[%s2429_s7 + $0x25c] ss:$12 sps:$4 sm:$0xff]   ;;  %v2029_v63 = vld [vmem:[%s2429_s7 + $0xc4] ss:$12 sps:$4 sm:$0xff]  }
  0x76   : > { %v2031_v0 = vld [vmem:[%s2429_s7 + $0x244] ss:$12 sps:$4 sm:$0xff]   ;;  %v2033_v1 = vld [vmem:[%s2429_s7 + $0xc0] ss:$12 sps:$4 sm:$0xff]   ;;  %v2511_v5 = vld [vmem:[%s2422_s10 + $0x8] ss:$16 sps:$4 sm:$0xff]  }
  0x77   : > { %1004 = vmatpush1.bf16.msra.mxu0 %v1973_v23  ;;  %v2034_v2 = vld [vmem:[%s2429_s7 + $0x240] ss:$12 sps:$4 sm:$0xff]   ;;  %v2041_v3 = vld [vmem:[%s2429_s7 + $0x170] ss:$12 sps:$4 sm:$0xff]   ;;  %v2045_v9 = vld [vmem:[%s2429_s7 + $0x158] ss:$12 sps:$4 sm:$0xff]  }
  0x78   : > { %1047 = vmatpush1.bf16.msra.mxu1 %v1974_v24  ;;  %1005 = vmatprep.subr.bf16.mxu0 %v1975_v25  ;;  %v2508_v4 = vld [vmem:[%s2422_s10] ss:$16 sps:$4 sm:$0xff]   ;;  %v2046_v10 = vld [vmem:[%s2429_s7 + $0x2d8] ss:$12 sps:$4 sm:$0xff]   ;;  %v2053_v17 = vld [vmem:[%s2429_s7 + $0x128] ss:$12 sps:$4 sm:$0xff]  }
  0x79   : > { %1048 = vmatprep.subr.bf16.mxu1 %v1977_v26  ;;  %v2042_v6 = vld [vmem:[%s2429_s7 + $0x2f0] ss:$12 sps:$4 sm:$0xff]   ;;  %v2047_v11 = vld [vmem:[%s2429_s7 + $0x98] ss:$12 sps:$4 sm:$0xff]   ;;  %v2049_v13 = vld [vmem:[%s2429_s7 + $0x140] ss:$12 sps:$4 sm:$0xff]  }
  0x7a   : > { %v2043_v7 = vld [vmem:[%s2429_s7 + $0xb0] ss:$12 sps:$4 sm:$0xff]   ;;  %v2048_v12 = vld [vmem:[%s2429_s7 + $0x218] ss:$12 sps:$4 sm:$0xff]   ;;  %v2050_v14 = vld [vmem:[%s2429_s7 + $0x2c0] ss:$12 sps:$4 sm:$0xff]  }
  0x7b   : > { %1006 = vmatpush1.bf16.msra.mxu0 %v1979_v27  ;;  %v2044_v8 = vld [vmem:[%s2429_s7 + $0x230] ss:$12 sps:$4 sm:$0xff]   ;;  %v2051_v15 = vld [vmem:[%s2429_s7 + $0x80] ss:$12 sps:$4 sm:$0xff]   ;;  %v2054_v18 = vld [vmem:[%s2429_s7 + $0x2a8] ss:$12 sps:$4 sm:$0xff]  }
  0x7c   : > { %1049 = vmatpush1.bf16.msra.mxu1 %v1980_v28  ;;  %1007 = vmatprep.subr.bf16.mxu0 %v1981_v29  ;;  %v2052_v16 = vld [vmem:[%s2429_s7 + $0x200] ss:$12 sps:$4 sm:$0xff]   ;;  %v2055_v19 = vld [vmem:[%s2429_s7 + $0x68] ss:$12 sps:$4 sm:$0xff]   ;;  %v2057_v21 = vld [vmem:[%s2429_s7 + $0x110] ss:$12 sps:$4 sm:$0xff]  }
  0x7d   : > { %1050 = vmatprep.subr.bf16.mxu1 %v1983_v30  ;;  %v2056_v20 = vld [vmem:[%s2429_s7 + $0x1e8] ss:$12 sps:$4 sm:$0xff]   ;;  %v2058_v22 = vld [vmem:[%s2429_s7 + $0x290] ss:$12 sps:$4 sm:$0xff]   ;;  %v2061_v25 = vld [vmem:[%s2429_s7 + $0xf8] ss:$12 sps:$4 sm:$0xff]  }
  0x7e   : > { %v2059_v23 = vld [vmem:[%s2429_s7 + $0x50] ss:$12 sps:$4 sm:$0xff]   ;;  %v2062_v26 = vld [vmem:[%s2429_s7 + $0x278] ss:$12 sps:$4 sm:$0xff]   ;;  %v2065_v29 = vld [vmem:[%s2429_s7 + $0xe0] ss:$12 sps:$4 sm:$0xff]  }
  0x7f   : > { %1008 = vmatpush1.bf16.msra.mxu0 %v1985_v31  ;;  %v2060_v24 = vld [vmem:[%s2429_s7 + $0x1d0] ss:$12 sps:$4 sm:$0xff]   ;;  %v2063_v27 = vld [vmem:[%s2429_s7 + $0x38] ss:$12 sps:$4 sm:$0xff]   ;;  %v2066_v30 = vld [vmem:[%s2429_s7 + $0x260] ss:$12 sps:$4 sm:$0xff]  }
  0x80   : > { %1051 = vmatpush1.bf16.msra.mxu1 %v1986_v32  ;;  %1009 = vmatprep.subr.bf16.mxu0 %v1987_v33  ;;  %v2064_v28 = vld [vmem:[%s2429_s7 + $0x1b8] ss:$12 sps:$4 sm:$0xff]   ;;  %v2067_v31 = vld [vmem:[%s2429_s7 + $0x20] ss:$12 sps:$4 sm:$0xff]   ;;  %v2069_v33 = vld [vmem:[%s2429_s7 + $0xc8] ss:$12 sps:$4 sm:$0xff]  }
  0x81   : > { %1052 = vmatprep.subr.bf16.mxu1 %v1989_v34  ;;  %v2068_v32 = vld [vmem:[%s2429_s7 + $0x1a0] ss:$12 sps:$4 sm:$0xff]   ;;  %v2070_v34 = vld [vmem:[%s2429_s7 + $0x248] ss:$12 sps:$4 sm:$0xff]   ;;  %p1720_p3 = scmp.ne.s32.totalorder %s2257_s21, 1 }
  0x83   : > { %1010 = vmatpush2.bf16.msra.mxu0 %v1991_v35  ;;  %v2071_v35 = vld [vmem:[%s2429_s7 + $0x8] ss:$12 sps:$4 sm:$0xff]  }
  0x84   : > { %1053 = vmatpush2.bf16.msra.mxu1 %v1992_v36  ;;  %1011 = vmatprep.subr.bf16.mxu0 %v1993_v37  ;;  %v2072_v36 = vld [vmem:[%s2429_s7 + $0x188] ss:$12 sps:$4 sm:$0xff]  }
  0x85   : > { %1054 = vmatprep.subr.bf16.mxu1 %v1995_v38  ;;  %v323_v38 = vld [vmem:[#allocation2 + $0x28] sm:$0xff] }
  0x87   : > { %1012 = vmatpush2.bf16.msra.mxu0 %v1997_v39 }
  0x88   : > { %1055 = vmatpush2.bf16.msra.mxu1 %v1998_v40  ;;  %1013 = vmatprep.subr.bf16.mxu0 %v1999_v41 }
  0x89   : > { %1056 = vmatprep.subr.bf16.mxu1 %v2001_v42  ;;  %v324_v42 = vld [vmem:[#allocation2 + $0x10] sm:$0xff] }
  0x8b   : > { %1014 = vmatpush2.bf16.msra.mxu0 %v2003_v43 }
  0x8c   : > { %1057 = vmatpush2.bf16.msra.mxu1 %v2004_v44  ;;  %1015 = vmatprep.subr.bf16.mxu0 %v2005_v45 }
  0x8d   : > { %1058 = vmatprep.subr.bf16.mxu1 %v2007_v46 }
  0x8f   : > { %1016 = vmatpush2.bf16.msra.mxu0 %v2009_v47  ;;  %v326_v47 = vld [vmem:[#allocation2] sm:$0xff] }
  0x90   : > { %1059 = vmatpush2.bf16.msra.mxu1 %v2010_v48  ;;  %1017 = vmatprep.subr.bf16.mxu0 %v2011_v49 }
  0x91   : > { %1060 = vmatprep.subr.bf16.mxu1 %v2013_v51 }
  0x93   : > { %1018 = vmatpush2.bf16.msra.mxu0 %v2015_v53 }
  0x94   : > { %1061 = vmatpush2.bf16.msra.mxu1 %v2016_v54  ;;  %1019 = vmatprep.subr.bf16.mxu0 %v2017_v55 }
  0x95   : > { %1062 = vmatprep.subr.bf16.mxu1 %v2019_v56 }
  0x97   : > { %1020 = vmatpush2.bf16.msra.mxu0 %v2021_v57 }
  0x98   : > { %1063 = vmatpush2.bf16.msra.mxu1 %v2022_v58  ;;  %1021 = vmatprep.subr.bf16.mxu0 %v2023_v59 }
  0x99   : > { %1064 = vmatprep.subr.bf16.mxu1 %v2025_v60 }
  0x9b   : > { %1022 = vmatpush2.bf16.msra.mxu0 %v2027_v61 }
  0x9c   : > { %1065 = vmatpush2.bf16.msra.mxu1 %v2028_v62  ;;  %1023 = vmatprep.subr.bf16.mxu0 %v2029_v63  ;;  %v325_v63 = vld [vmem:[#allocation2 + $0x8] sm:$0xff] }
  0x9d   : > { %1066 = vmatprep.subr.bf16.mxu1 %v2031_v0 }
  0x9f   : > { %1024 = vmatpush2.bf16.msra.mxu0 %v2033_v1 }
  0xa0   : > { %1067 = vmatpush2.bf16.msra.mxu1 %v2034_v2  ;;  %1751 = vmatprep.subr.bf16.mxu0 %v2041_v3 }
  0xa1   : > { %1773 = vmatprep.subr.bf16.mxu1 %v2042_v6 }
  0xa2   : > { %1026 = vmatmul.mubr.bf16.vlgmr.msra.gmra.mxu0 %v2508_v4 }
  0xa3   : > { %1069 = vmatmul.mubr.bf16.vlgmr.msra.gmra.mxu1 %v2511_v5  ;;  %1752 = vmatpush3.bf16.msra.mxu0 %v2043_v7 }
  0xa4   : > { %1774 = vmatpush3.bf16.msra.mxu1 %v2044_v8  ;;  %1753 = vmatprep.subr.bf16.mxu0 %v2045_v9  ;;  %v328_v8 = vld [vmem:[#allocation2 + $0x20] sm:$0xff] }
  0xa5   : > { %1775 = vmatprep.subr.bf16.mxu1 %v2046_v10  ;;  %1111 = vmatprep.mubr.bf16.mxu0 %v2037_v50 }
  0xa6   : > { %1152 = vmatprep.mubr.bf16.mxu1 %v2040_v52  ;;  %v327_v52 = vld [vmem:[#allocation2 + $0x18] sm:$0xff] }
  0xa7   : > { %1754 = vmatpush3.bf16.msra.mxu0 %v2047_v11 }
  0xa8   : > { %1776 = vmatpush3.bf16.msra.mxu1 %v2048_v12  ;;  %1755 = vmatprep.subr.bf16.mxu0 %v2049_v13 }
  0xa9   : > { %1777 = vmatprep.subr.bf16.mxu1 %v2050_v14 }
  0xab   : > { %1756 = vmatpush3.bf16.msra.mxu0 %v2051_v15 }
  0xac   : > { %1778 = vmatpush3.bf16.msra.mxu1 %v2052_v16  ;;  %1757 = vmatprep.subr.bf16.mxu0 %v2053_v17 }
  0xad   : > { %1779 = vmatprep.subr.bf16.mxu1 %v2054_v18 }
  0xaf   : > { %1758 = vmatpush3.bf16.msra.mxu0 %v2055_v19 }
  0xb0   : > { %1780 = vmatpush3.bf16.msra.mxu1 %v2056_v20  ;;  %1759 = vmatprep.subr.bf16.mxu0 %v2057_v21 }
  0xb1   : > { %1781 = vmatprep.subr.bf16.mxu1 %v2058_v22 }
  0xb3   : > { %1760 = vmatpush3.bf16.msra.mxu0 %v2059_v23 }
  0xb4   : > { %1782 = vmatpush3.bf16.msra.mxu1 %v2060_v24  ;;  %1761 = vmatprep.subr.bf16.mxu0 %v2061_v25 }
  0xb5   : > { %1783 = vmatprep.subr.bf16.mxu1 %v2062_v26 }
  0xb7   : > { %1762 = vmatpush3.bf16.msra.mxu0 %v2063_v27 }
  0xb8   : > { %1784 = vmatpush3.bf16.msra.mxu1 %v2064_v28  ;;  %1763 = vmatprep.subr.bf16.mxu0 %v2065_v29 }
  0xb9   : > { %1785 = vmatprep.subr.bf16.mxu1 %v2066_v30 }
  0xbb   : > { %1764 = vmatpush3.bf16.msra.mxu0 %v2067_v31 }
  0xbc   : > { %1786 = vmatpush3.bf16.msra.mxu1 %v2068_v32  ;;  %1765 = vmatprep.subr.bf16.mxu0 %v2069_v33 }
  0xbd   : > { %1787 = vmatprep.subr.bf16.mxu1 %v2070_v34 }
  0xbf   : > { %1766 = vmatpush3.bf16.msra.mxu0 %v2071_v35 }
  0xc0   : > { %1788 = vmatpush3.bf16.msra.mxu1 %v2072_v36 }
  0xc2   : > { %1112 = vmatmul.mubr.bf16.vlgmr.msra.gmra.mxu0 %v2508_v4 }
  0xc3   : > { %1153 = vmatmul.mubr.bf16.vlgmr.msra.gmra.mxu1 %v2511_v5 }
 0x162   : > { %v1027_v37 = vpop.f32.mrf.mxu0 }
 0x163   : > { %v1070_v39 = vpop.f32.mrf.mxu1 }
 0x164   : > { %v1071_v40 = vadd.f32 %v1070_v39, %v1027_v37  ;;  %v1029_v41 = vpop.f32.mrf.mxu0 }
 0x165   : > { %v1072_v43 = vpop.f32.mrf.mxu1 }
 0x166   : > { %v1161_v44 = vadd.f32 %v1071_v40, %v323_v38  ;;  %v1073_v45 = vadd.f32 %v1072_v43, %v1029_v41  ;;  %v1031_v46 = vpop.f32.mrf.mxu0 }
 0x167   : > { %v1074_v48 = vpop.f32.mrf.mxu1 }
 0x168   : > { %1167 = vst [vmem:[#allocation2 + $0x28] sm:$0xff] %v1161_v44  ;;  %v1162_v49 = vadd.f32 %v1073_v45, %v324_v42  ;;  %v1075_v50 = vadd.f32 %v1074_v48, %v1031_v46  ;;  %v1033_v51 = vpop.f32.mrf.mxu0 }
 0x169   : > { %v1076_v53 = vpop.f32.mrf.mxu1 }
 0x16a   : > { %1168 = vst [vmem:[#allocation2 + $0x10] sm:$0xff] %v1162_v49  ;;  %v1164_v54 = vadd.f32 %v1075_v50, %v326_v47  ;;  %v1077_v55 = vadd.f32 %v1076_v53, %v1033_v51 }
 0x16c   : > { %1170 = vst [vmem:[#allocation2] sm:$0xff] %v1164_v54  ;;  %v1165_v56 = vadd.f32 %v1077_v55, %v327_v52 }
 0x16e   : > { %1171 = vst [vmem:[#allocation2 + $0x18] sm:$0xff] %v1165_v56 }
 0x182   : > { %v1767_v57 = vpop.f32.mrf.mxu0 }
 0x183   : > { %v1789_v58 = vpop.f32.mrf.mxu1 }
 0x184   : > { %v1768_v59 = vpop.f32.mrf.mxu0 }
 0x185   : > { %v1790_v60 = vpop.f32.mrf.mxu1  ;;  %v1769_v61 = vadd.f32 %v1768_v59, %v1767_v57 }
 0x186   : > { %v1791_v62 = vadd.f32 %v1790_v60, %v1789_v58  ;;  %v1770_v0 = vpop.f32.mrf.mxu0 }
 0x187   : > { %v1792_v1 = vpop.f32.mrf.mxu1 }
 0x188   : > { %v1155_v2 = vadd.f32 %v1791_v62, %v1769_v61  ;;  %v1771_v3 = vpop.f32.mrf.mxu0 }
 0x189   : > { %v1793_v4 = vpop.f32.mrf.mxu1  ;;  %v1772_v6 = vadd.f32 %v1771_v3, %v1770_v0 }
 0x18a   : > { %v1163_v5 = vadd.f32 %v1155_v2, %v325_v63  ;;  %v1794_v7 = vadd.f32 %v1793_v4, %v1792_v1 }
 0x18c   : > { %1169 = vst [vmem:[#allocation2 + $0x8] sm:$0xff] %v1163_v5  ;;  %v1158_v9 = vadd.f32 %v1794_v7, %v1772_v6  ;;  %1176 = sbr.rel (%p1720_p3) target bundleno = 640 (0x280), region = 60 }
 0x18e   : > { %v1166_v10 = vadd.f32 %v1158_v9, %v328_v8 }
 0x190   : > { %1172 = vst [vmem:[#allocation2 + $0x20] sm:$0xff] %v1166_v10 }
 0x191   : > { %v2073_v11 = vld [vmem:[#allocation8 + $0x78] sm:$0xff]   ;;  %v2278_v12 = vmov 0.0   ;;  %vm2279_vm0 = vmmov 0   ;;  %v2076_v15 = vld [vmem:[#allocation8 + $0x70] sm:$0xff]   ;;  %v2079_v18 = vld [vmem:[#allocation8 + $0x68] sm:$0xff]   ;;  %v1185_v24 = vlaneseq }
 0x192   : > { %1826 = vmatprep.subr.bf16.mxu1 %v2278_v12  ;;  %v2074_v13 = vld [vmem:[#allocation8 + $0x38] sm:$0xff]   ;;  %1795 = vmatprep.subr.bf16.mxu0 %v2073_v11  ;;  %v2077_v16 = vld [vmem:[#allocation8 + $0x30] sm:$0xff]   ;;  %v2080_v19 = vld [vmem:[#allocation8 + $0x28] sm:$0xff]  }
 0x193   : > { %v2075_v14 = vld [vmem:[#allocation8 + $0xb8] sm:$0xff]   ;;  %1842 = vmatprep.mubr.msk.bf16.mxu1 %vm2279_vm0, %v2278_v12  ;;  %1796 = vmatpush3.bf16.msra.mxu0 %v2074_v13  ;;  %v2078_v17 = vld [vmem:[#allocation8 + $0xb0] sm:$0xff]   ;;  %v2081_v20 = vld [vmem:[#allocation8 + $0xa8] sm:$0xff]   ;;  %v1186_v28 = vshrl.u32 %v1185_v24, 7 }
 0x194   : > { %1827 = vmatpush3.bf16.msra.mxu1 %v2075_v14  ;;  %1797 = vmatprep.subr.bf16.mxu0 %v2076_v15  ;;  %v2082_v21 = vld [vmem:[#allocation8 + $0x60] sm:$0xff]   ;;  %v2085_v25 = vld [vmem:[#allocation8 + $0x58] sm:$0xff]   ;;  %v2088_v29 = vld [vmem:[#allocation8 + $0x50] sm:$0xff]  }
 0x195   : > { %1828 = vmatprep.subr.bf16.mxu1 %v2278_v12  ;;  %v2083_v22 = vld [vmem:[#allocation8 + $0x20] sm:$0xff]   ;;  %v2086_v26 = vld [vmem:[#allocation8 + $0x18] sm:$0xff]   ;;  %v2089_v30 = vld [vmem:[#allocation8 + $0x10] sm:$0xff]   ;;  %v1191_v32 = vsub.s32 1, %v1186_v28  ;;  %v1187_v34 = vsub.s32 0, %v1186_v28  ;;  %v1195_v36 = vsub.s32 2, %v1186_v28 }
 0x196   : > { %v2084_v23 = vld [vmem:[#allocation8 + $0xa0] sm:$0xff]   ;;  %v2087_v27 = vld [vmem:[#allocation8 + $0x98] sm:$0xff]   ;;  %v2090_v31 = vld [vmem:[#allocation8 + $0x90] sm:$0xff]  }
 0x197   : > { %1798 = vmatpush3.bf16.msra.mxu0 %v2077_v16  ;;  %v2091_v33 = vld [vmem:[#allocation8 + $0x48] sm:$0xff]   ;;  %v2094_v38 = vld [vmem:[#allocation8 + $0x40] sm:$0xff]   ;;  %v1183_v41 = vld [vmem:[%s2596_s2] sm:$0x7] }
 0x198   : > { %1829 = vmatpush3.bf16.msra.mxu1 %v2078_v17  ;;  %1799 = vmatprep.subr.bf16.mxu0 %v2079_v18  ;;  %v2092_v35 = vld [vmem:[#allocation8 + $0x8] sm:$0xff]   ;;  %v1178_v39 = vld [vmem:[#allocation2 + $0x10] sm:$0xff]  ;;  %v1192_v42 = vrot.slane %v1183_v41, %v1191_v32  ;;  %v1177_v43 = vld [vmem:[#allocation2 + $0x28] sm:$0xff]  ;;  %v1188_v45 = vrot.slane %v1183_v41, %v1187_v34  ;;  %v1196_v47 = vrot.slane %v1183_v41, %v1195_v36 }
 0x199   : > { %1830 = vmatprep.subr.bf16.mxu1 %v2278_v12  ;;  %v2093_v37 = vld [vmem:[#allocation8 + $0x88] sm:$0xff]   ;;  %v1180_v44 = vld [vmem:[#allocation2] sm:$0xff]  ;;  %v1179_v46 = vld [vmem:[#allocation2 + $0x8] sm:$0xff] }
 0x19a   : > { %v1181_v40 = vld [vmem:[#allocation2 + $0x18] sm:$0xff]  ;;  %v1182_v48 = vld [vmem:[#allocation2 + $0x20] sm:$0xff]  ;;  %v2095_v49 = vld [vmem:[#allocation8] sm:$0xff]   ;;  %v1201_v50 = vadd.f32 %v1192_v42, %v1178_v39  ;;  %v1200_v52 = vadd.f32 %v1188_v45, %v1177_v43  ;;  %v1203_v53 = vadd.f32 %v1188_v45, %v1180_v44  ;;  %v1202_v55 = vadd.f32 %v1196_v47, %v1179_v46 }
 0x19b   : > { %1800 = vmatpush3.bf16.msra.mxu0 %v2080_v19  ;;  %v1204_v51 = vadd.f32 %v1192_v42, %v1181_v40  ;;  %v2096_v54 = vld [vmem:[#allocation8 + $0x80] sm:$0xff]   ;;  %v1205_v56 = vadd.f32 %v1196_v47, %v1182_v48  ;;  %v1721_v4 = vld [vmem:[%s2598_s4] ss:$0 sm:$0xff] }
 0x19c   : > { %1831 = vmatpush3.bf16.msra.mxu1 %v2081_v20  ;;  %1801 = vmatprep.subr.bf16.mxu0 %v2082_v21  ;;  %v1207_v57 = vmax.f32 %v1201_v50, 0.0  ;;  %v1206_v59 = vmax.f32 %v1200_v52, 0.0  ;;  %v1209_v60 = vmax.f32 %v1203_v53, 0.0  ;;  %v1208_v61 = vmax.f32 %v1202_v55, 0.0 }
 0x19d   : > { %1832 = vmatprep.subr.bf16.mxu1 %v2278_v12  ;;  %v1210_v58 = vmax.f32 %v1204_v51, 0.0  ;;  %v1211_v62 = vmax.f32 %v1205_v56, 0.0 }
 0x19e   : > { %v1212_v0 = vpack.c.bf16 %v1209_v60, %v1206_v59 }
 0x19f   : > { %1802 = vmatpush3.bf16.msra.mxu0 %v2083_v22  ;;  %v1213_v63 = vpack.c.bf16 %v1210_v58, %v1207_v57  ;;  %v1214_v1 = vpack.c.bf16 %v1211_v62, %v1208_v61 }
 0x1a0   : > { %1833 = vmatpush3.bf16.msra.mxu1 %v2084_v23  ;;  %1803 = vmatprep.subr.bf16.mxu0 %v2085_v25 }
 0x1a1   : > { %1834 = vmatprep.subr.bf16.mxu1 %v2278_v12  ;;  %1446 = vmatprep.mubr.bf16.mxu0 %v1213_v63 }
 0x1a3   : > { %1804 = vmatpush3.bf16.msra.mxu0 %v2086_v26 }
 0x1a4   : > { %1835 = vmatpush3.bf16.msra.mxu1 %v2087_v27  ;;  %1805 = vmatprep.subr.bf16.mxu0 %v2088_v29 }
 0x1a5   : > { %1836 = vmatprep.subr.bf16.mxu1 %v2278_v12 }
 0x1a7   : > { %1806 = vmatpush3.bf16.msra.mxu0 %v2089_v30 }
 0x1a8   : > { %1837 = vmatpush3.bf16.msra.mxu1 %v2090_v31  ;;  %1807 = vmatprep.subr.bf16.mxu0 %v2091_v33 }
 0x1a9   : > { %1838 = vmatprep.subr.bf16.mxu1 %v2278_v12 }
 0x1ab   : > { %1808 = vmatpush3.bf16.msra.mxu0 %v2092_v35 }
 0x1ac   : > { %1839 = vmatpush3.bf16.msra.mxu1 %v2093_v37  ;;  %1809 = vmatprep.subr.bf16.mxu0 %v2094_v38 }
 0x1ad   : > { %1840 = vmatprep.subr.bf16.mxu1 %v2278_v12 }
 0x1af   : > { %1810 = vmatpush3.bf16.msra.mxu0 %v2095_v49 }
 0x1b0   : > { %1841 = vmatpush3.bf16.msra.mxu1 %v2096_v54 }
 0x1b2   : > { %1447 = vmatmul.mubr.bf16.vlgmr.msra.gmra.mxu0 %v1212_v0 }
 0x1b3   : > { %1843 = vmatmul.mubr.bf16.vlgmr.msra.gmra.mxu1 %v1214_v1 }
 0x272   : > { %v1811_v2 = vpop.f32.mrf.mxu0 }
 0x273   : > { %v1489_v3 = vpop.f32.mrf.mxu1 }
 0x274   : > { %v1812_v5 = vpop.f32.mrf.mxu0 }
 0x275   : > { %v1813_v6 = vadd.f32 %v1812_v5, %v1811_v2  ;;  %v1844_v7 = vpop.f32.mrf.mxu1 }
 0x276   : > { %v1814_v8 = vpop.f32.mrf.mxu0 }
 0x277   : > { %v1449_v9 = vadd.f32 %v1813_v6, %v1721_v4  ;;  %v1492_v10 = vpop.f32.mrf.mxu1 }
 0x278   : > { %v1815_v11 = vpop.f32.mrf.mxu0 }
 0x279   : > { %v1490_v12 = vadd.f32 %v1489_v3, %v1449_v9  ;;  %v1816_v13 = vadd.f32 %v1815_v11, %v1814_v8  ;;  %v1845_v14 = vpop.f32.mrf.mxu1 }
 0x27b   : > { %1496 = vst [vmem:[#allocation9] sm:$0xff] %v1490_v12  ;;  %v1452_v15 = vadd.f32 %v1816_v13, %v1721_v4 }
 0x27d   : > { %v1493_v16 = vadd.f32 %v1492_v10, %v1452_v15 }
 0x27f   : > { %1497 = vst [vmem:[#allocation9 + $0x8] sm:$0xff] %v1493_v16 }
 0x280 PF: > { %p1875_p0 = scmp.eq.s32.totalorder %s2342_s24, 1  ;;  %s2280_s15 = smov [#allocation9]  }
 0x281   : > { %s1507_s17 = sshll.u32 %s2280_s15, 4  ;;  %s1508_s17 = int_to_ptr.vmem [resolvable:$true] %s1507_s17 }
 0x282   : > { %s2179_s18 = scalar_lea.vmem %s1508_s17, 256  ;;  %p2186_p7 = scmp.lt.s32.totalorder %s1508_s17, %s1508_s17 }
 0x283   : > { %p2180_p1 = scmp.ne.s32.totalorder %s1508_s17, %s2179_s18  ;;  %p2187_p4 = scmp.lt.s32.totalorder %s2179_s18, %s2179_s18 }
 0x285   : > { %p2181_p2 = pnand %p2180_p1, %p1875_p0  ;;  %p2188_p6 = por %p2187_p4, %p2186_p7 }
 0x287   : > { %p2182_p5 = pneg %p2181_p2 }
 0x289   : > { %p2189_p9 = pnand %p2188_p6, %p2182_p5 }
 0x28b   : > { %2192 = shalt.err (!%p2189_p9)
}
 0x28c   : > { %s2281_s30 = smov 128   ;;  %s2282_s12 = smov 8  }
 0x28d   : > { %1858 = dma.vmem_to_hbm [thread:$0]  (%p1875_p0), %s1508_s17, 256, %s2599_s5, [#allocation5], %s2281_s30, %s2281_s30, %s2282_s12  }
 0x28e   : > { %2240 = dma.done.wait (%p1875_p0), [#allocation5], 256  }
 0x28f   : > { %2242 = vsyncadd (%p1875_p0), [#allocation5], 4294967040 }
 0x290 PF: > { %s22_s23 = sadd.s32 1, %s2265_s23   ;;  %s2617_s14 = sld [smem:[#allocation14_spill]] }
 0x291   : > { %p19_p10 = scmp.ge.s32.totalorder %s22_s23, 4   ;;  %s2618_s20 = sld [smem:[#allocation16_spill]] }
 0x292   : > { %s2619_s28 = sld [smem:[#allocation15_spill]]  ;;  %s2620_s18 = smov %s2249_s19 }
 0x293   : > { %s2622_s21 = smov %s2261_s22 }
 0x294   :  { %21 = sbr.rel (!%p19_p10) target bundleno = 10 (0xa), region = 103 }
 0x296   : > { %s2621_s19 = smov %s2617_s14 }
 0x298   : > { %s2623_s22 = smov %s2619_s28 }
 0x299   :  { %1523 = vsyncpa [#allocation4], 1 }
 0x29a   :  { %1525 = vsyncpa [#allocation4 + $0x1], 1 }
 0x29b   :  { %1526 = vsyncpa [#allocation7], 1 }
 0x29c   :  { %1528 = vsyncpa [#allocation7 + $0x1], 1 }
 0x29d   :  { %1529 = vsyncpa [#allocation5], 1 }
 0x29e   :  { %1531 = vsyncpa [#allocation5 + $0x1], 1 }

</bundles_post_ra>
